<compile_context>
chip_gen: v5e
topology: v5e:2x2
jax: 0.10.0
libtpu: 0.0.40
codegen_flags: <defaults>
</compile_context>

<pallas_src>
import functools

import jax
import jax.numpy as jnp
from jax.experimental import pallas as pl
from jax.experimental.pallas import tpu as pltpu

_LANE = 128
_SUBLANE = 8


def _round_up(a, b):
    return (a + b - 1) // b * b


def _vmem_budget():
    """Generation-aware (vmem_limit_bytes, per-tile f32 byte budget)."""
    vmem_cap = None
    try:
        vmem_cap = int(pltpu.get_tpu_info().vmem_capacity_bytes)
    except Exception:  # pragma: no cover - query unavailable -> be conservative
        vmem_cap = None
    if vmem_cap is not None and vmem_cap > (96 << 20):
        # v5e / v6e: 128 MiB of VMEM per TensorCore.
        return 64 << 20, 8 << 20
    # v7x (64 MiB per TensorCore) or unknown hardware: stay conservative.
    return 32 << 20, 4 << 20


def _choose_tile(T, C, tile_budget_bytes, max_ts=None):
    """Lane-dense tile width TS (multiple of 128), sized by f32 bytes."""
    t_lane = _round_up(T, _LANE)
    row_bytes = _round_up(C, _SUBLANE) * 4            # budget in f32 bytes
    ts = (tile_budget_bytes // row_bytes) // _LANE * _LANE
    ts = max(_LANE, min(ts, t_lane))
    if max_ts is not None:
        ts = max(_LANE, min(ts, max_ts))
    return ts


# ---------------------------------------------------------------------------
# Kernels
# ---------------------------------------------------------------------------
def _fused_kernel(x_ref, w_ref, b_ref, o_ref, *, count, eps):
    """Single-pass gLN: stats + normalize + affine on one resident batch slab."""
    x = x_ref[...].astype(jnp.float32)                       # (1, C, T)
    s = jnp.sum(x, axis=(1, 2), keepdims=True)               # (1, 1, 1)
    sq = jnp.sum(x * x, axis=(1, 2), keepdims=True)
    mean = s / count
    var = jnp.maximum(sq / count - mean * mean, 0.0)
    inv = jax.lax.rsqrt(var + eps)
    scale = w_ref[...] * inv                                  # (1, C, 1)
    shift = b_ref[...] - mean * scale
    o_ref[...] = (x * scale + shift).astype(o_ref.dtype)


def _stats_kernel(x_ref, sum_ref, sq_ref, *, ts, t_true, tiles_per_split,
                  needs_mask):
    """Per-batch sum / sum-of-squares, f32 accumulation across the tile axis."""
    p = pl.program_id(1)
    t = pl.program_id(2)

    @pl.when(t == 0)
    def _():
        sum_ref[...] = jnp.zeros_like(sum_ref)
        sq_ref[...] = jnp.zeros_like(sq_ref)

    x = x_ref[...].astype(jnp.float32)                        # (1, C, TS)
    if needs_mask:
        # Mask the tail lanes of the ragged last tile (OOB VMEM is garbage).
        tile_idx = p * tiles_per_split + t
        lane = jax.lax.broadcasted_iota(jnp.int32, x.shape, 2)
        valid = (tile_idx * ts + lane) < t_true
        x = jnp.where(valid, x, 0.0)

    s = jnp.sum(x, axis=(1, 2), keepdims=True)                # (1, 1, 1)
    sq = jnp.sum(x * x, axis=(1, 2), keepdims=True)
    sum_ref[...] += s.reshape(sum_ref.shape)
    sq_ref[...] += sq.reshape(sq_ref.shape)


def _apply_kernel(x_ref, scale_ref, shift_ref, o_ref):
    """Fused normalize + affine: y = x * scale + shift (2 VALU ops / element)."""
    y = x_ref[...].astype(jnp.float32) * scale_ref[...] + shift_ref[...]
    o_ref[...] = y.astype(o_ref.dtype)


# ---------------------------------------------------------------------------
# Wrapper
# ---------------------------------------------------------------------------
def global_layer_norm(x, weight=None, bias=None, eps=1e-8, *,
                      _force_two_pass=False, _max_ts=None):
    """Pallas GlobalLayerNorm matching the PyTorch module's forward.

    x      : [N, C, K, S] or [N, C, L]
    weight : [C, 1, 1] / [C, 1] / [C] or None (elementwise_affine=False)
    bias   : same shape as weight or None
    """
    if x.ndim not in (3, 4):
        raise ValueError("GlobalLayerNorm expects 3-D or 4-D input")

    orig_shape = x.shape
    N, C = orig_shape[0], orig_shape[1]
    x3 = x.reshape(N, C, -1)                 # long axis on lanes
    T = x3.shape[-1]
    count = float(C * T)                     # true element count per batch

    vmem_limit, tile_budget = _vmem_budget()

    # Parameters kept in f32 (never truncated to the activation dtype).
    if weight is None:
        w = jnp.ones((C,), jnp.float32)
    else:
        w = jnp.asarray(weight, jnp.float32).reshape(C)
    if bias is None:
        b = jnp.zeros((C,), jnp.float32)
    else:
        b = jnp.asarray(bias, jnp.float32).reshape(C)

    # ---- fused single-pass fast path ---------------------------------------
    slab_f32 = _round_up(C, _SUBLANE) * _round_up(T, _LANE) * 4
    if (not _force_two_pass) and slab_f32 <= tile_budget // 2:
        kernel = functools.partial(_fused_kernel, count=count, eps=float(eps))
        y = pl.pallas_call(
            kernel,
            out_shape=jax.ShapeDtypeStruct((N, C, T), x.dtype),
            grid_spec=pltpu.PrefetchScalarGridSpec(
                num_scalar_prefetch=0,
                grid=(N,),
                in_specs=[pl.BlockSpec((1, C, T), lambda n: (n, 0, 0)),
                          pl.BlockSpec((1, C, 1), lambda n: (0, 0, 0)),
                          pl.BlockSpec((1, C, 1), lambda n: (0, 0, 0))],
                out_specs=pl.BlockSpec((1, C, T), lambda n: (n, 0, 0)),
            ),
            compiler_params=pltpu.CompilerParams(
                dimension_semantics=("parallel",),
                vmem_limit_bytes=vmem_limit,
            ),
        )(x3, w.reshape(1, C, 1), b.reshape(1, C, 1))
        return y.reshape(orig_shape)

    # ---- two-pass path ------------------------------------------------------
    TS = _choose_tile(T, C, tile_budget, max_ts=_max_ts)
    num_tiles = pl.cdiv(T, TS)
    needs_mask = (T % TS) != 0

    # Split the reduction (tile) axis so both v7x TensorCores get work even
    # when N is small; a no-op on single-TC v5e/v6e.
    split = 2 if (num_tiles >= 2 and num_tiles % 2 == 0) else 1
    tiles_per_split = num_tiles // split

    stats_kernel = functools.partial(
        _stats_kernel, ts=TS, t_true=T,
        tiles_per_split=tiles_per_split, needs_mask=needs_mask)

    sums, sqs = pl.pallas_call(
        stats_kernel,
        out_shape=(jax.ShapeDtypeStruct((N, split, 1, 1), jnp.float32),
                   jax.ShapeDtypeStruct((N, split, 1, 1), jnp.float32)),
        grid_spec=pltpu.PrefetchScalarGridSpec(
            num_scalar_prefetch=0,
            grid=(N, split, tiles_per_split),
            in_specs=[pl.BlockSpec(
                (1, C, TS),
                lambda n, p, t: (n, 0, p * tiles_per_split + t))],
            out_specs=[pl.BlockSpec((1, 1, 1, 1), lambda n, p, t: (n, p, 0, 0)),
                       pl.BlockSpec((1, 1, 1, 1), lambda n, p, t: (n, p, 0, 0))],
        ),
        compiler_params=pltpu.CompilerParams(
            dimension_semantics=("parallel", "parallel", "arbitrary"),
            vmem_limit_bytes=vmem_limit,
        ),
    )(x3)

    # Tiny per-batch / per-channel scalar math in plain JAX (f32 throughout).
    s = jnp.sum(sums.reshape(N, split), axis=1)
    sq = jnp.sum(sqs.reshape(N, split), axis=1)
    mean = s / jnp.float32(count)
    ex2 = sq / jnp.float32(count)
    var = jnp.maximum(ex2 - mean * mean, 0.0)
    inv = jax.lax.rsqrt(var + jnp.float32(eps))

    scale = w[None, :] * inv[:, None]                  # (N, C)
    shift = b[None, :] - mean[:, None] * scale         # (N, C)

    y = pl.pallas_call(
        _apply_kernel,
        out_shape=jax.ShapeDtypeStruct((N, C, T), x.dtype),
        grid_spec=pltpu.PrefetchScalarGridSpec(
            num_scalar_prefetch=0,
            grid=(N, num_tiles),
            in_specs=[pl.BlockSpec((1, C, TS), lambda n, t: (n, 0, t)),
                      pl.BlockSpec((1, C, 1), lambda n, t: (n, 0, 0)),
                      pl.BlockSpec((1, C, 1), lambda n, t: (n, 0, 0))],
            out_specs=pl.BlockSpec((1, C, TS), lambda n, t: (n, 0, t)),
        ),
        compiler_params=pltpu.CompilerParams(
            dimension_semantics=("parallel", "parallel"),
            vmem_limit_bytes=vmem_limit,
        ),
    )(x3, scale[:, :, None], shift[:, :, None])

    return y.reshape(orig_shape)


# ---------------------------------------------------------------------------
# Reference + self-test
# ---------------------------------------------------------------------------
def _reference(x, weight, bias, eps=1e-8):
    # Pure-JAX reference mirroring the PyTorch forward (3-D and 4-D).
    axes = tuple(range(1, x.ndim))
    mean = jnp.mean(x, axis=axes, keepdims=True)
    var = jnp.mean((x - mean) ** 2, axis=axes, keepdims=True)
    w = jnp.reshape(weight, (1, -1) + (1,) * (x.ndim - 2))
    b = jnp.reshape(bias, (1, -1) + (1,) * (x.ndim - 2))
    return w * (x - mean) / jnp.sqrt(var + eps) + b


if __name__ == "__main__":
    key = jax.random.PRNGKey(0)
    k1, k2, k3, k4 = jax.random.split(key, 4)
    N, C, K, S = 2, 4, 16, 16

    # ---- 4-D path [N, C, K, S], non-trivial affine (fused fast path) -------
    x4 = jax.random.normal(k1, (N, C, K, S), dtype=jnp.float32)
    w4 = 1.0 + 0.1 * jax.random.normal(k2, (C, 1, 1), dtype=jnp.float32)
    b4 = 0.1 * jax.random.normal(k3, (C, 1, 1), dtype=jnp.float32)

    out4 = jax.block_until_ready(global_layer_norm(x4, w4, b4, eps=1e-8))
    ref4 = _reference(x4, w4, b4, eps=1e-8)
    assert out4.shape == (N, C, K, S)
    assert jnp.allclose(out4, ref4, atol=1e-5, rtol=1e-5), float(
        jnp.max(jnp.abs(out4 - ref4)))

    # ---- 3-D path [N, C, L] with L not a multiple of 128 (fused path) ------
    L = 40
    x3 = jax.random.normal(k4, (N, C, L), dtype=jnp.float32)
    w3 = jnp.ones((C, 1), dtype=jnp.float32)
    b3 = jnp.zeros((C, 1), dtype=jnp.float32)
    out3 = jax.block_until_ready(global_layer_norm(x3, w3, b3, eps=1e-8))
    ref3 = _reference(x3, w3, b3, eps=1e-8)
    assert out3.shape == (N, C, L)
    assert jnp.allclose(out3, ref3, atol=1e-5, rtol=1e-5), float(
        jnp.max(jnp.abs(out3 - ref3)))

    # ---- elementwise_affine=False path --------------------------------------
    out_na = jax.block_until_ready(global_layer_norm(x3, None, None, eps=1e-8))
    ref_na = _reference(x3, jnp.ones((C,)), jnp.zeros((C,)), eps=1e-8)
    assert jnp.allclose(out_na, ref_na, atol=1e-5, rtol=1e-5)

    # ---- forced two-pass path (split reduction axis, T % TS == 0) ----------
    out_tp = jax.block_until_ready(global_layer_norm(
        x4, w4, b4, eps=1e-8, _force_two_pass=True, _max_ts=128))
    assert jnp.allclose(out_tp, ref4, atol=1e-5, rtol=1e-5), float(
        jnp.max(jnp.abs(out_tp - ref4)))

    # ---- forced two-pass path with a ragged last tile (tail mask) ----------
    L2 = 200
    x3r = jax.random.normal(jax.random.PRNGKey(5), (N, C, L2), dtype=jnp.float32)
    out3r = jax.block_until_ready(global_layer_norm(
        x3r, w3 := jnp.ones((C, 1)), b3r := jnp.zeros((C, 1)),
        eps=1e-8, _force_two_pass=True, _max_ts=128))
    ref3r = _reference(x3r, w3, b3r, eps=1e-8)
    assert jnp.allclose(out3r, ref3r, atol=1e-5, rtol=1e-5), float(
        jnp.max(jnp.abs(out3r - ref3r)))

    print("KERNEL_OK")
</pallas_src>

<mosaic_0001>
module attributes {stable_mosaic.version = 11 : i64} {
  func.func @_fused_kernel(%arg0: i32, %arg1: memref<1x4x256xf32, #tpu.memory_space<vmem>>, %arg2: memref<1x4x1xf32, #tpu.memory_space<vmem>>, %arg3: memref<1x4x1xf32, #tpu.memory_space<vmem>>, %arg4: memref<1x4x256xf32, #tpu.memory_space<vmem>>) attributes {dimension_semantics = [#tpu.dimension_semantics<parallel>], iteration_bounds = array<i64: 2>, scalar_prefetch = 0 : i64, scratch_operands = 0 : i64, tpu.core_type = #tpu.core_type<tc>, window_params = [{transform_indices = @transform_0, window_bounds = array<i64: 1, 4, 256>}, {pipeline_mode = #tpu.pipeline_mode<synchronous>, transform_indices = @transform_1, window_bounds = array<i64: 1, 4, 1>}, {pipeline_mode = #tpu.pipeline_mode<synchronous>, transform_indices = @transform_2, window_bounds = array<i64: 1, 4, 1>}, {transform_indices = @transform_3, window_bounds = array<i64: 1, 4, 256>}]} {
    %c0 = arith.constant 0 : index
    %c0_0 = arith.constant 0 : index
    %c0_1 = arith.constant 0 : index
    %0 = vector.load %arg1[%c0, %c0_0, %c0_1] : memref<1x4x256xf32, #tpu.memory_space<vmem>>, vector<1x4x256xf32>
    %cst = arith.constant dense<0.000000e+00> : vector<1xf32>
    %1 = vector.multi_reduction <add>, %0, %cst [1, 2] : vector<1x4x256xf32> to vector<1xf32>
    %2 = vector.shape_cast %1 : vector<1xf32> to vector<1x1x1xf32>
    %3 = arith.mulf %0, %0 : vector<1x4x256xf32>
    %cst_2 = arith.constant dense<0.000000e+00> : vector<1xf32>
    %4 = vector.multi_reduction <add>, %3, %cst_2 [1, 2] : vector<1x4x256xf32> to vector<1xf32>
    %5 = vector.shape_cast %4 : vector<1xf32> to vector<1x1x1xf32>
    %cst_3 = arith.constant 1.024000e+03 : f32
    %6 = vector.broadcast %cst_3 : f32 to vector<1x1x1xf32>
    %7 = arith.divf %2, %6 : vector<1x1x1xf32>
    %cst_4 = arith.constant 1.024000e+03 : f32
    %8 = vector.broadcast %cst_4 : f32 to vector<1x1x1xf32>
    %9 = arith.divf %5, %8 : vector<1x1x1xf32>
    %10 = arith.mulf %7, %7 : vector<1x1x1xf32>
    %11 = arith.subf %9, %10 : vector<1x1x1xf32>
    %cst_5 = arith.constant 0.000000e+00 : f32
    %12 = vector.broadcast %cst_5 : f32 to vector<1x1x1xf32>
    %13 = arith.maximumf %11, %12 : vector<1x1x1xf32>
    %cst_6 = arith.constant 9.99999993E-9 : f32
    %14 = vector.broadcast %cst_6 : f32 to vector<1x1x1xf32>
    %15 = arith.addf %13, %14 : vector<1x1x1xf32>
    %16 = math.rsqrt %15 : vector<1x1x1xf32>
    %c0_7 = arith.constant 0 : index
    %c0_8 = arith.constant 0 : index
    %c0_9 = arith.constant 0 : index
    %17 = vector.load %arg2[%c0_7, %c0_8, %c0_9] : memref<1x4x1xf32, #tpu.memory_space<vmem>>, vector<1x4x1xf32>
    %18 = vector.broadcast %16 : vector<1x1x1xf32> to vector<1x4x1xf32>
    %19 = arith.mulf %17, %18 : vector<1x4x1xf32>
    %c0_10 = arith.constant 0 : index
    %c0_11 = arith.constant 0 : index
    %c0_12 = arith.constant 0 : index
    %20 = vector.load %arg3[%c0_10, %c0_11, %c0_12] : memref<1x4x1xf32, #tpu.memory_space<vmem>>, vector<1x4x1xf32>
    %21 = vector.broadcast %7 : vector<1x1x1xf32> to vector<1x4x1xf32>
    %22 = arith.mulf %21, %19 : vector<1x4x1xf32>
    %23 = arith.subf %20, %22 : vector<1x4x1xf32>
    %24 = vector.broadcast %19 : vector<1x4x1xf32> to vector<1x4x256xf32>
    %25 = arith.mulf %0, %24 : vector<1x4x256xf32>
    %26 = vector.broadcast %23 : vector<1x4x1xf32> to vector<1x4x256xf32>
    %27 = arith.addf %25, %26 : vector<1x4x256xf32>
    %c0_13 = arith.constant 0 : index
    %c0_14 = arith.constant 0 : index
    %c0_15 = arith.constant 0 : index
    %28 = vector.load %arg4[%c0_13, %c0_14, %c0_15] : memref<1x4x256xf32, #tpu.memory_space<vmem>>, vector<1x4x256xf32>
    tpu.vector_store %arg4[%c0_13, %c0_14, %c0_15], %27 {strides = array<i32>} : memref<1x4x256xf32, #tpu.memory_space<vmem>>, vector<1x4x256xf32>,
    return
  }
  func.func @transform_0(%arg0: i32) -> (i32, i32, i32) {
    %c0_i32 = arith.constant 0 : i32
    %c0_i32_0 = arith.constant 0 : i32
    %c0_i32_1 = arith.constant 0 : i32
    return %arg0, %c0_i32, %c0_i32_0 : i32, i32, i32
  }
  func.func @transform_1(%arg0: i32) -> (i32, i32, i32) {
    %c0_i32 = arith.constant 0 : i32
    %c0_i32_0 = arith.constant 0 : i32
    %c0_i32_1 = arith.constant 0 : i32
    %c0_i32_2 = arith.constant 0 : i32
    return %c0_i32, %c0_i32_0, %c0_i32_1 : i32, i32, i32
  }
  func.func @transform_2(%arg0: i32) -> (i32, i32, i32) {
    %c0_i32 = arith.constant 0 : i32
    %c0_i32_0 = arith.constant 0 : i32
    %c0_i32_1 = arith.constant 0 : i32
    %c0_i32_2 = arith.constant 0 : i32
    return %c0_i32, %c0_i32_0, %c0_i32_1 : i32, i32, i32
  }
  func.func @transform_3(%arg0: i32) -> (i32, i32, i32) {
    %c0_i32 = arith.constant 0 : i32
    %c0_i32_0 = arith.constant 0 : i32
    %c0_i32_1 = arith.constant 0 : i32
    return %arg0, %c0_i32, %c0_i32_0 : i32, i32, i32
  }
}

</mosaic_0001>

<bundles_post_ra>
// kernel: tpu_custom_call.1
= control target key start
LH: loop header
LB: loop body
LE: loop exit
PB: predicated region body
PF: predicated region fallthrough
CT: control target
= control target key end

     0   :  { %8 = vsyncpa [#allocation3], 0  ;;  %s697_s0 = inlined_call_operand.hbm [shape: f32[2,4,256], index: 0, kind: input, shape index: {}]   ;;  %s698_s1 = inlined_call_operand.vmem [shape: f32[1,4,1], index: 1, kind: input, shape index: {}]   ;;  %s699_s2 = inlined_call_operand.vmem [shape: f32[1,4,1], index: 2, kind: input, shape index: {}]   ;;  %s700_s3 = inlined_call_operand.hbm [shape: f32[2,4,256], index: 3, kind: output, shape index: {}]  }
   0x1   :  { %10 = vsyncpa [#allocation3 + $0x1], 0 }
   0x2   :  { %11 = vsyncpa [#allocation4], 0 }
   0x3   :  { %13 = vsyncpa [#allocation4 + $0x1], 0  ;;  %s554_s12 = smov 0   ;;  %s556_s13 = smov 0  }
   0x4   :  { %s558_s14 = smov 0   ;;  %s560_s15 = smov 0  }
   0x5 LB: > { %s575_s16 = sadd.s32 4294967295, %s529_s15   ;;  %s362_s17 = sadd.s32 4294967294, %s529_s15   ;;  %s529_s15 = sphi %s560_s15, %s710_s15   ;;  %s525_s14 = sphi %s558_s14, %s709_s14   ;;  %s521_s13 = sphi %s556_s13, %s708_s13   ;;  %s517_s12 = sphi %s554_s12, %s707_s12  }
   0x6   : > { %s579_s18 = sadd.s32 1, %s529_s15   ;;  %s26_s19 = sadd.s32 1, %s525_s14 }
   0x7   : > { %s23_s20 = ssub.s32 %s529_s15, %s579_s18  ;;  %p33_p0 = scmp.ne.s32.totalorder %s525_s14, %s521_s13 }
   0x8   : > { %p24_p1 = scmp.eq.s32.totalorder %s23_s20, 0  ;;  %p34_p2 = scmp.eq.s32.totalorder %s529_s15, 0 }
   0x9   : > { %p39_p3 = scmp.ne.s32.totalorder %s521_s13, %s517_s12  ;;  %p40_p4 = scmp.eq.s32.totalorder %s575_s16, 0 }
   0xa   : > { %s591_s21 = scalar_select %p24_p1, %s525_s14, %s26_s19  }
   0xb   : > { %p593_p5 = por %p34_p2, %p33_p0  ;;  %p597_p6 = por %p40_p4, %p39_p3 }
   0xc   : > { %p105_p7 = scmp.eq.s32.totalorder %s575_s16, 1  ;;  %p111_p8 = scmp.eq.s32.totalorder %s362_s17, 1 }
   0xd   : > { %p390_p10 = scmp.lt.s32.totalorder %s529_s15, 2  ;;  %s137_s26 = sand.u32 1, %s525_s14  }
   0xe   : > { %p604_p11 = por %p105_p7, %p33_p0  ;;  %p608_p12 = por %p111_p8, %p39_p3 }
   0xf   : > { %s376_s27 = sshll.u32 %s529_s15, 3  ;;  %s365_s28 = sshll.u32 %s137_s26, 3 }
  0x10   : > { %s146_s4 = scalar_lea.hbm %s697_s0, %s376_s27  ;;  %s141_s6 = scalar_lea.vmem [#allocation2], %s365_s28 }
  0x11   : > { %s148_s5 = sshll.u32 %s146_s4, 4  ;;  %s150_s7 = sshll.u32 %s141_s6, 4  ;;  %s149_s5 = int_to_ptr.hbm [resolvable:$true] %s148_s5  ;;  %s151_s7 = int_to_ptr.vmem [resolvable:$true] %s150_s7 }
  0x12   : > { %p619_p13 = pnand %p390_p10, %p593_p5  ;;  %p368_p0 = scmp.ge.s32.totalorder %s529_s15, 1 }
  0x13   : > { %p155_p1 = scmp.lt.s32.totalorder %s529_s15, 3  ;;  %s138_s9 = scalar_lea.sflag [#allocation3], %s137_s26 }
  0x14   : > { %s433_s10 = sshra.s32 %s149_s5, 4  ;;  %p437_p3 = pneg %p619_p13  ;;  %s434_s10 = int_to_ptr.hbm [resolvable:$true] %s433_s10 }
  0x15   : > { %s435_s11 = scalar_lea.hbm %s434_s10, 8  ;;  %s440_s20 = scalar_lea.hbm %s697_s0, 16 }
  0x16   : > { %p436_p2 = scmp.ne.s32.totalorder %s434_s10, %s435_s11  ;;  %p441_p5 = scmp.lt.s32.totalorder %s434_s10, %s697_s0 }
  0x17   : > { %p442_p8 = scmp.lt.s32.totalorder %s440_s20, %s435_s11 }
  0x18   : > { %p438_p4 = pnand %p437_p3, %p436_p2 }
  0x19   : > { %p443_p10 = por %p442_p8, %p441_p5 }
  0x1a   : > { %p439_p7 = pneg %p438_p4 }
  0x1c   : > { %p444_p9 = pnand %p443_p10, %p439_p7 }
  0x1e   : > { %447 = shalt.err (!%p444_p9)
}
  0x1f   : > { %385 = dma.hbm_to_vmem [thread:$0]  (!%p619_p13), %s149_s5, 128, %s151_s7, %s138_s9  }
  0x20   : > { %p156_p2 = pnand %p368_p0, %p155_p1 }
  0x21   : > { %s640_s26 = sand.u32 (!%p156_p2), 1, %s521_s13  }
  0x22   : > { %159 = sbr.rel (%p156_p2) target bundleno = 346 (0x15a), region = 32  ;;  %s369_s28 = sshll.u32 (!%p156_p2), %s640_s26, 3 }
  0x23   : > { %s162_s29 = scalar_lea.sflag (!%p156_p2), [#allocation3], %s640_s26  ;;  %s165_s30 = scalar_lea.vmem (!%p156_p2), [#allocation2], %s369_s28 }
  0x27   : > { %508 = dma.done.wait (%p597_p6), %s162_s29, 128  }
  0x28   : > { %510 = vsyncadd (%p597_p6), %s162_s29, 4294967168  ;;  %v650_v0 = vld [vmem:[%s165_s30] sm:$0xff]  ;;  %vm196_vm0 = vcmask 1043456   ;;  %v531_v12 = vmov 1024.0   ;;  %v532_v13 = vmov 0   ;;  %s377_s7 = sshll.u32 %s575_s16, 3 }
  0x29   : > { %191 = vst [vmem:[#allocation1] ss:$2 sm:$0xff] %v650_v0  ;;  %v208_v1 = vmul.f32 %v650_v0, %v650_v0  ;;  %429 = vrcp.f32 %v531_v12  ;;  %427 = vset.pattern.permute.xlu1 %v532_v13  ;;  %428 = vset.pattern.permute.xlu0 %v532_v13  ;;  %v249_v46 = vld [vmem:[%s698_s1] sm:$0xf]  ;;  %v533_v52 = vmov 839922192   ;;  %s287_s10 = scalar_lea.hbm %s700_s3, %s377_s7 }
  0x2a   : > { %v251_v50 = vld [vmem:[%s699_s2] sm:$0xf]  ;;  %v259_v53 = vunpack.c.l.s4 %v533_v52  ;;  %s188_s11 = scalar_lea.vmem [#allocation5], %s369_s28  ;;  %s291_s19 = sshll.u32 %s287_s10, 4  ;;  %s292_s19 = int_to_ptr.hbm [resolvable:$true] %s291_s19 }
  0x2b   : > { %s289_s17 = sshll.u32 %s188_s11, 4  ;;  %s276_s20 = scalar_lea.sflag [#allocation4], %s640_s26  ;;  %s290_s17 = int_to_ptr.vmem [resolvable:$true] %s289_s17 }
  0x2c   : > { %v260_v55 = vunpack.c.0.s8 %v259_v53  ;;  %s477_s16 = sshra.s32 %s292_s19, 4  ;;  %s483_s28 = scalar_lea.hbm %s700_s3, 16  ;;  %s478_s16 = int_to_ptr.hbm [resolvable:$true] %s477_s16 }
  0x2d   : > { %s479_s22 = scalar_lea.hbm %s478_s16, 8  ;;  %p484_p0 = scmp.lt.s32.totalorder %s478_s16, %s700_s3 }
  0x2e   : > { %p480_p6 = scmp.ne.s32.totalorder %s478_s16, %s479_s22  ;;  %p485_p1 = scmp.lt.s32.totalorder %s483_s28, %s479_s22 }
  0x2f   : > { %v430_v14 = vpop.eup %429 }
  0x30   : > { %v192_v2 = vld.sshfl [vmem:[#allocation1] sm:$0xff pattern:$0x75316420]  ;;  %v193_v3 = vld.sshfl [vmem:[#allocation1 + $0x8] sm:$0xff pattern:$0x75316420]  ;;  %vm231_vm1 = vweird.f32 %v430_v14  ;;  %p481_p9 = pnand %p480_p6, %p604_p11  ;;  %p486_p3 = por %p485_p1, %p484_p0 }
  0x31   : > { %v197_v4 = vsel %vm196_vm0, %v192_v2, 0.0  ;;  %v198_v5 = vsel %vm196_vm0, %v193_v3, 0.0  ;;  %210 = vst [vmem:[#allocation1] ss:$2 sm:$0xff] %v208_v1  ;;  %v227_v15 = vmul.f32 1024.0, %v430_v14 }
  0x32   : > { %v199_v6 = vadd.f32 %v198_v5, %v197_v4  ;;  %p482_p13 = pneg %p481_p9 }
  0x33   : > { %v228_v18 = vsub.f32 1.0, %v227_v15 }
  0x34   : > { %200 = vadd.xlane.f32.xlu0 %v199_v6  ;;  %p487_p4 = pnand %p486_p3, %p482_p13 }
  0x35   : > { %v229_v21 = vmul.f32 %v430_v14, %v228_v18 }
  0x37   : > { %v230_v26 = vadd.f32 %v430_v14, %v229_v21 }
  0x38   : > { %v211_v7 = vld.sshfl [vmem:[#allocation1] sm:$0xff pattern:$0x75316420]  ;;  %v212_v8 = vld.sshfl [vmem:[#allocation1 + $0x8] sm:$0xff pattern:$0x75316420] }
  0x39   : > { %v215_v9 = vsel %vm196_vm0, %v211_v7, 0.0  ;;  %v216_v10 = vsel %vm196_vm0, %v212_v8, 0.0  ;;  %v232_v30 = vsel %vm231_vm1, %v430_v14, %v230_v26 }
  0x3a   : > { %v217_v11 = vadd.f32 %v216_v10, %v215_v9 }
  0x3c   : > { %218 = vadd.xlane.f32.xlu0 %v217_v11 }
  0xa7   : > { %v201_v16 = vpop.xlane.xlu0 %200 }
  0xa8   : > { %v202_v17 = vrot.slane %v201_v16, 4 }
  0xaa   : > { %v203_v19 = vadd.f32 %v202_v17, %v201_v16 }
  0xac   : > { %v204_v20 = vrot.slane %v203_v19, 2 }
  0xae   : > { %v205_v22 = vadd.f32 %v204_v20, %v203_v19 }
  0xaf   : > { %v219_v23 = vpop.xlane.xlu0 %218 }
  0xb0   : > { %v206_v24 = vrot.slane %v205_v22, 1  ;;  %v220_v25 = vrot.slane %v219_v23, 4 }
  0xb2   : > { %v221_v27 = vadd.f32 %v220_v25, %v219_v23  ;;  %v207_v28 = vadd.f32 %v206_v24, %v205_v22 }
  0xb4   : > { %v222_v29 = vrot.slane %v221_v27, 2  ;;  %v233_v33 = vmul.f32 %v232_v30, %v207_v28 }
  0xb6   : > { %v223_v31 = vadd.f32 %v222_v29, %v221_v27  ;;  %v235_v36 = vmul.f32 %v233_v33, %v233_v33 }
  0xb8   : > { %v224_v32 = vrot.slane %v223_v31, 1 }
  0xba   : > { %v225_v34 = vadd.f32 %v224_v32, %v223_v31 }
  0xbc   : > { %v234_v35 = vmul.f32 %v232_v30, %v225_v34 }
  0xbe   : > { %v236_v37 = vsub.f32 %v234_v35, %v235_v36 }
  0xc0   : > { %v237_v38 = vmax.f32 %v236_v37, 0.0 }
  0xc2   : > { %v238_v39 = vadd.f32 1e-08, %v237_v38 }
  0xc4   : > { %431 = vrsqrt.f32 %v238_v39  ;;  %vm245_vm3 = vweird.f32 %v238_v39 }
  0xca   : > { %v432_v40 = vpop.eup %431 }
  0xcb   : > { %v240_v41 = vmul.f32 %v432_v40, %v238_v39  ;;  %vm246_vm2 = vweird.f32 %v432_v40 }
  0xcc   : > { %vm247_vm4 = vmor %vm245_vm3, %vm246_vm2 }
  0xcd   : > { %v241_v42 = vmul.f32 %v432_v40, %v240_v41 }
  0xcf   : > { %v242_v43 = vmul.f32 0.5, %v241_v42 }
  0xd1   : > { %v243_v44 = vsub.f32 1.5, %v242_v43 }
  0xd3   : > { %v244_v45 = vmul.f32 %v432_v40, %v243_v44 }
  0xd5   : > { %v248_v47 = vsel %vm247_vm4, %v432_v40, %v244_v45 }
  0xd6   : > { %v250_v48 = vmul.f32 %v249_v46, %v248_v47 }
  0xd8   : > { %256 = vperm.xlu1 %427, %v250_v48   ;;  %v252_v49 = vmul.f32 %v250_v48, %v233_v33 }
  0xda   : > { %v253_v51 = vsub.f32 %v251_v50, %v252_v49 }
  0xe0   : > { %266 = vperm.xlu1 %427, %v253_v51  }
 0x14a   : > { %v257_v54 = vpop.permute.xlu1 %256 }
 0x14b   : > { %v261_v56 = vperm.slane %v257_v54, %v260_v55 }
 0x14d   : > { %v263_v58 = vmul.f32 %v261_v56, %v650_v0 }
 0x152   : > { %v267_v57 = vpop.permute.xlu1 %266 }
 0x153   : > { %v271_v59 = vperm.slane %v267_v57, %v260_v55 }
 0x155   : > { %v273_v60 = vadd.f32 %v271_v59, %v263_v58 }
 0x157   : > { %274 = vst [vmem:[%s188_s11] sm:$0xff] %v273_v60 }
 0x158   : > { %490 = shalt.err (!%p487_p4)
}
 0x159   : > { %380 = dma.vmem_to_hbm [thread:$0]  (%p604_p11), %s290_s17, 128, %s292_s19, %s276_s20  }
 0x15a PF: > { %s303_s26 = sand.u32 1, %s517_s12   ;;  %p706_p7 = scmp.ge.s32.totalorder %s529_s15, 2 }
 0x15b   : > { %s304_s4 = scalar_lea.sflag [#allocation4], %s303_s26 }
 0x15c   : > { %p387_p5 = pnand %p706_p7, %p608_p12 }
 0x15e   : > { %p388_p8 = pneg %p387_p5 }
 0x160   : > { %512 = dma.done.wait (%p388_p8), %s304_s4, 128  }
 0x161   : > { %514 = vsyncadd (%p388_p8), %s304_s4, 4294967168  ;;  %p16_p10 = scmp.ge.s32.totalorder %s579_s18, 4   ;;  %s707_s12 = smov %s521_s13 }
 0x162   : > { %s708_s13 = smov %s525_s14  ;;  %s709_s14 = smov %s591_s21 }
 0x163   : > { %s710_s15 = smov %s579_s18  ;;  %18 = sbr.rel (!%p16_p10) target bundleno = 5 (0x5), region = 77 }
 0x168   :  { %310 = vsyncpa [#allocation3], 1 }
 0x169   :  { %312 = vsyncpa [#allocation3 + $0x1], 1 }
 0x16a   :  { %313 = vsyncpa [#allocation4], 1 }
 0x16b   :  { %315 = vsyncpa [#allocation4 + $0x1], 1 }

</bundles_post_ra>
